<compile_context>
chip_gen: v7x
topology: tpu7x:2x2x1
jax: 0.10.0
libtpu: 0.0.40
codegen_flags: <defaults>
</compile_context>

<pallas_src>
import math

import jax
import jax.numpy as jnp
from jax.experimental import pallas as pl
from jax.experimental.pallas import tpu as pltpu


# ---------------------------------------------------------------------------
# Positional-encoding table (matches the PyTorch __init__ exactly).
# ---------------------------------------------------------------------------
def make_positional_table(max_len, num_hiddens, dtype=jnp.float32):
    assert num_hiddens % 2 == 0, "num_hiddens must be even (as in the PyTorch module)"
    pos = jnp.arange(max_len, dtype=jnp.float32)[:, None]                      # (L, 1)
    div = jnp.power(10000.0,
                    jnp.arange(0, num_hiddens, 2, dtype=jnp.float32) / num_hiddens)
    x = pos / div                                                              # (L, H/2)
    p = jnp.zeros((max_len, num_hiddens), dtype=jnp.float32)
    p = p.at[:, 0::2].set(jnp.sin(x))
    p = p.at[:, 1::2].set(jnp.cos(x))
    return p.astype(dtype)                                                     # (max_len, H)


# ---------------------------------------------------------------------------
# Kernel: lane-dense broadcast add   out[b, :] = x[b, :] + p[0, :]
# ---------------------------------------------------------------------------
def _posenc_kernel(x_ref, p_ref, o_ref):
    # x_ref: (TB, TL)   p_ref: (1, TL)   o_ref: (TB, TL)
    # p broadcasts across the sublane (batch-row) axis; native dtype, no casts.
    o_ref[...] = x_ref[...] + p_ref[...]


def _choose_tiles(B, L, itemsize):
    """Pick (TB, TL) satisfying the (8,128) rule with ~4 MiB blocks."""
    target_block_bytes = 4 * 1024 * 1024
    sublane_pack = max(8, (8 * 4) // itemsize)       # 8 f32, 16 bf16/f16, 32 int8/fp8

    if B <= sublane_pack:
        # Full batch extent (legal: block dim == full array dim); derive the
        # lane tile from the byte budget instead of a fixed cap.
        TB = B
        lane_budget = max(128, (target_block_bytes // (TB * itemsize) // 128) * 128)
        TL = L if L <= lane_budget else lane_budget
    else:
        lane_budget = max(128, (target_block_bytes // (sublane_pack * itemsize) // 128) * 128)
        TL = L if L <= lane_budget else lane_budget
        rows_budget = max(1, target_block_bytes // (TL * itemsize))
        TB = min(B, rows_budget)
        TB = max(sublane_pack, (TB // sublane_pack) * sublane_pack)

    # Megacore (v7x has 2 TCs): if everything landed in a single block and the
    # block is non-trivial, split the lane axis so both cores get work.
    if pl.cdiv(B, TB) * pl.cdiv(L, TL) == 1:
        block_bytes = TB * TL * itemsize
        if block_bytes >= 256 * 1024 and L >= 256:
            TL = pl.cdiv(pl.cdiv(L, 2), 128) * 128   # multiple of 128, gives >= 2 blocks
    return TB, TL


def _posenc_pallas(x2, p2):
    """x2: (B, L) flattened input; p2: (1, L) flattened P slice (same dtype)."""
    B, L = x2.shape
    itemsize = jnp.dtype(x2.dtype).itemsize
    TB, TL = _choose_tiles(B, L, itemsize)

    # Grid order: lane blocks outer, batch blocks inner.  With batch innermost
    # the P block index (0, j) is constant across consecutive steps, so Pallas
    # skips re-DMAing the P row.
    grid = (pl.cdiv(L, TL), pl.cdiv(B, TB))

    return pl.pallas_call(
        _posenc_kernel,
        out_shape=jax.ShapeDtypeStruct((B, L), x2.dtype),
        grid=grid,
        in_specs=[
            pl.BlockSpec((TB, TL), lambda j, i: (i, j)),    # X tile
            pl.BlockSpec((1, TL), lambda j, i: (0, j)),     # P row (batch-broadcast)
        ],
        out_specs=pl.BlockSpec((TB, TL), lambda j, i: (i, j)),
        compiler_params=pltpu.CompilerParams(
            dimension_semantics=("parallel", "parallel"),
            vmem_limit_bytes=48 * 1024 * 1024,
        ),
    )(x2, p2)


# ---------------------------------------------------------------------------
# Module-like wrapper: builds the table once, caches flattened slices per
# (seq_len, dtype) so the per-call path is just the fused Pallas add.
# ---------------------------------------------------------------------------
class PositionalEncoding:
    def __init__(self, num_hiddens, dropout=0.0, max_len=1000, dtype=jnp.float32):
        self.num_hiddens = num_hiddens
        self.dropout = dropout          # identity in eval mode
        self.p_table = make_positional_table(max_len, num_hiddens, dtype)
        self._flat_cache = {}           # (S, dtype) -> (1, S*H) array

    def _flat_slice(self, S, dtype):
        key = (S, jnp.dtype(dtype).name)
        p2 = self._flat_cache.get(key)
        if p2 is None:
            p2 = (self.p_table[:S, :].astype(dtype)
                  .reshape(1, S * self.num_hiddens))
            self._flat_cache[key] = p2
        return p2

    def __call__(self, x):
        B, S, H = x.shape
        assert H == self.num_hiddens and S <= self.p_table.shape[0]
        p2 = self._flat_slice(S, x.dtype)
        L = S * H
        out2 = _posenc_pallas(x.reshape(B, L), p2)   # contiguous collapse: free
        return out2.reshape(B, S, H)


# Convenience functional form (same semantics).
def positional_encoding(x, p_table):
    B, S, H = x.shape
    assert p_table.shape[0] >= S and p_table.shape[1] == H
    p2 = p_table[:S, :].astype(x.dtype).reshape(1, S * H)
    return _posenc_pallas(x.reshape(B, S * H), p2).reshape(B, S, H)


# ---------------------------------------------------------------------------
# Pure-JAX reference mirroring the PyTorch module (eval mode).
# ---------------------------------------------------------------------------
def _reference(x, p_table):
    S = x.shape[1]
    return x + p_table[None, :S, :].astype(x.dtype)


if __name__ == "__main__":
    key = jax.random.PRNGKey(0)
    k1, k2, k3 = jax.random.split(key, 3)

    # --- Small case consistent with the module: batch=2, seq=8, hidden=32 ---
    num_hiddens, max_len = 32, 1000
    posenc = PositionalEncoding(num_hiddens, dropout=0.1, max_len=max_len)
    B, S, H = 2, 8, num_hiddens
    x = jax.random.normal(k1, (B, S, H), dtype=jnp.float32)
    out = posenc(x)
    jax.block_until_ready(out)
    assert out.shape == (B, S, H)
    assert jnp.allclose(out, _reference(x, posenc.p_table), atol=1e-6, rtol=1e-6)

    # --- Ragged / multi-block case: B not a multiple of 8, L not a multiple of 128 ---
    B2, S2, H2 = 5, 300, 48                      # L = 14400 -> lane split + padded edge
    posenc2 = PositionalEncoding(H2, dropout=0.0, max_len=1000)
    x2 = jax.random.normal(k2, (B2, S2, H2), dtype=jnp.float32)
    out2 = posenc2(x2)
    jax.block_until_ready(out2)
    assert jnp.allclose(out2, _reference(x2, posenc2.p_table), atol=1e-6, rtol=1e-6)

    # --- Larger bf16 case (dtype-aware sublane packing path) ---
    B3, S3, H3 = 16, 512, 64
    posenc3 = PositionalEncoding(H3, dropout=0.0, max_len=1000)
    x3 = jax.random.normal(k3, (B3, S3, H3), dtype=jnp.float32).astype(jnp.bfloat16)
    out3 = posenc3(x3)
    jax.block_until_ready(out3)
    ref3 = x3 + posenc3.p_table[None, :S3, :].astype(jnp.bfloat16)   # same-dtype add
    assert jnp.allclose(out3.astype(jnp.float32), ref3.astype(jnp.float32))

    print("KERNEL_OK")
</pallas_src>

<mosaic_0001>
module attributes {stable_mosaic.version = 11 : i64} {
  func.func @_posenc_kernel(%arg0: i32, %arg1: i32, %arg2: memref<2x256xf32, #tpu.memory_space<vmem>>, %arg3: memref<1x256xf32, #tpu.memory_space<vmem>>, %arg4: memref<2x256xf32, #tpu.memory_space<vmem>>) attributes {dimension_semantics = [#tpu.dimension_semantics<parallel>, #tpu.dimension_semantics<parallel>], iteration_bounds = array<i64: 1, 1>, scalar_prefetch = 0 : i64, scratch_operands = 0 : i64, tpu.core_type = #tpu.core_type<tc>, window_params = [{transform_indices = @transform_0, window_bounds = array<i64: 2, 256>}, {transform_indices = @transform_1, window_bounds = array<i64: 1, 256>}, {transform_indices = @transform_2, window_bounds = array<i64: 2, 256>}]} {
    %c0 = arith.constant 0 : index
    %c0_0 = arith.constant 0 : index
    %0 = vector.load %arg2[%c0, %c0_0] : memref<2x256xf32, #tpu.memory_space<vmem>>, vector<2x256xf32>
    %c0_1 = arith.constant 0 : index
    %c0_2 = arith.constant 0 : index
    %1 = vector.load %arg3[%c0_1, %c0_2] : memref<1x256xf32, #tpu.memory_space<vmem>>, vector<1x256xf32>
    %2 = vector.broadcast %1 : vector<1x256xf32> to vector<2x256xf32>
    %3 = arith.addf %0, %2 : vector<2x256xf32>
    %c0_3 = arith.constant 0 : index
    %c0_4 = arith.constant 0 : index
    %4 = vector.load %arg4[%c0_3, %c0_4] : memref<2x256xf32, #tpu.memory_space<vmem>>, vector<2x256xf32>
    tpu.vector_store %arg4[%c0_3, %c0_4], %3 {strides = array<i32>} : memref<2x256xf32, #tpu.memory_space<vmem>>, vector<2x256xf32>,
    return
  }
  func.func @transform_0(%arg0: i32, %arg1: i32) -> (i32, i32) {
    %c0_i32 = arith.constant 0 : i32
    return %arg1, %arg0 : i32, i32
  }
  func.func @transform_1(%arg0: i32, %arg1: i32) -> (i32, i32) {
    %c0_i32 = arith.constant 0 : i32
    %c0_i32_0 = arith.constant 0 : i32
    return %c0_i32, %arg0 : i32, i32
  }
  func.func @transform_2(%arg0: i32, %arg1: i32) -> (i32, i32) {
    %c0_i32 = arith.constant 0 : i32
    return %arg1, %arg0 : i32, i32
  }
}

</mosaic_0001>

<bundles_post_ra>
// kernel: tpu_custom_call.1
= control target key start
LH: loop header
LB: loop body
LE: loop exit
PB: predicated region body
PF: predicated region fallthrough
CT: control target
= control target key end

     0   :  { %7 = vsyncpa [#allocation3], 0  ;;  %s157_s0 = inlined_call_operand.hbm [shape: f32[2,256], index: 0, kind: input, shape index: {}]   ;;  %s158_s1 = inlined_call_operand.vmem [shape: f32[1,256], index: 1, kind: input, shape index: {}]   ;;  %s159_s2 = inlined_call_operand.hbm [shape: f32[2,256], index: 2, kind: output, shape index: {}]  }
   0x1   :  { %8 = vsyncpa [#allocation4], 0  ;;  %s112_s9 = smov [#allocation2]   ;;  %s64_s13 = scalar_lea.hbm %s157_s0, 64 }
   0x2   :  { %s15_s10 = sshll.u32 %s112_s9, 4  ;;  %p65_p0 = scmp.ne.s32.totalorder %s157_s0, %s64_s13  ;;  %s16_s10 = int_to_ptr.vmem [resolvable:$true] %s15_s10 }
   0x3   :  { %p68_p1 = scmp.lt.u32.totalorder %s64_s13, %s157_s0 }
   0x5   :  { %p70_p2 = pnand %p68_p1, %p65_p0 }
   0x7   :  { %73 = shalt.err (!%p70_p2)
}
   0x8   :  { %s74_s18 = scalar_lea.vmem %s16_s10, 64  ;;  %p79_p4 = scmp.lt.s32.totalorder %s16_s10, %s16_s10 }
   0x9   :  { %p75_p3 = scmp.ne.s32.totalorder %s16_s10, %s74_s18  ;;  %p80_p5 = scmp.lt.s32.totalorder %s74_s18, %s74_s18 }
   0xb   :  { %p81_p6 = por %p80_p5, %p79_p4 }
   0xd   :  { %p82_p7 = pnand %p81_p6, %p75_p3 }
   0xf   :  { %85 = shalt.err (!%p82_p7)
}
  0x10   :  { %18 = dma.hbm_to_vmem [thread:$0]  %s157_s0, 64, %s16_s10, [#allocation3]  }
  0x11   :  { %108 = dma.done.wait [#allocation3], 64  }
  0x12   :  { %109 = vsyncadd [#allocation3], 4294967232  ;;  %v27_v0 = vlaneseq  ;;  %v113_v1 = vmov 1983009808   ;;  %v25_v7 = vld [vmem:[%s158_s1] sm:$0x3] }
  0x13   :  { %v37_v2 = vunpack.c.l.s4 %v113_v1  ;;  %v24_v12 = vld [vmem:[#allocation2] sm:$0xf]  ;;  %s114_s23 = smov [#allocation5]  }
  0x14   :  { %v28_v3 = vshrl.u32 %v27_v0, 7  ;;  %s52_s0 = sshll.u32 %s114_s23, 4  ;;  %s53_s0 = int_to_ptr.vmem [resolvable:$true] %s52_s0 }
  0x15   :  { %v38_v6 = vunpack.c.0.s8 %v37_v2  ;;  %s86_s24 = scalar_lea.vmem %s53_s0, 64  ;;  %p91_p9 = scmp.lt.s32.totalorder %s53_s0, %s53_s0 }
  0x16   :  { %v29_v4 = vsub.s32 0, %v28_v3  ;;  %v33_v5 = vsub.s32 1, %v28_v3  ;;  %p87_p8 = scmp.ne.s32.totalorder %s53_s0, %s86_s24  ;;  %p92_p10 = scmp.lt.s32.totalorder %s86_s24, %s86_s24 }
  0x17   :  { %v41_v10 = vsub.s32 %v38_v6, %v28_v3 }
  0x18   :  { %v30_v8 = vrot.slane %v25_v7, %v29_v4  ;;  %v34_v9 = vrot.slane %v25_v7, %v33_v5  ;;  %p93_p11 = por %p92_p10, %p91_p9 }
  0x1a   :  { %v35_v11 = vcombine.low %v30_v8, %v34_v9  ;;  %p94_p12 = pnand %p93_p11, %p87_p8 }
  0x1c   :  { %v42_v13 = vrot.slane %v35_v11, %v41_v10 }
  0x1e   :  { %v44_v14 = vadd.f32 %v42_v13, %v24_v12 }
  0x20   :  { %45 = vst [vmem:[#allocation5] sm:$0xf] %v44_v14 }
  0x21   :  { %97 = shalt.err (!%p94_p12)
}
  0x22   :  { %s98_s26 = scalar_lea.hbm %s159_s2, 64 }
  0x23   :  { %p99_p13 = scmp.ne.s32.totalorder %s159_s2, %s98_s26  ;;  %p102_p0 = scmp.lt.u32.totalorder %s98_s26, %s159_s2 }
  0x25   :  { %p104_p1 = pnand %p102_p0, %p99_p13 }
  0x27   :  { %107 = shalt.err (!%p104_p1)
}
  0x28   :  { %55 = dma.vmem_to_hbm [thread:$0]  %s53_s0, 64, %s159_s2, [#allocation4]  }
  0x29   :  { %110 = dma.done.wait [#allocation4], 64  }
  0x2a   :  { %111 = vsyncadd [#allocation4], 4294967232 }
  0x2b   :  { %59 = vsyncpa [#allocation3], 1 }
  0x2c   :  { %60 = vsyncpa [#allocation4], 1 }

</bundles_post_ra>
